<compile_context>
chip_gen: v7x
topology: tpu7x:2x2x1
jax: 0.10.0
libtpu: 0.0.40
codegen_flags: <defaults>
</compile_context>

<pallas_src>
import functools
import numpy as np
import jax
import jax.numpy as jnp
from jax import lax
from jax.experimental import pallas as pl
from jax.experimental.pallas import tpu as pltpu


# --------------------------------------------------------------------------- #
# Kernels
# --------------------------------------------------------------------------- #
def _fused_kernel(x_ref, seq_own_ref, seq_srt_ref, onehot_cb_ref, onehot_bc_ref,
                  inv_n_ref, bessel_ref, scale_ref, shift_ref, out_ref, *, eps):
    """Single-invocation path: x resident in VMEM, read once / write once."""
    B, C, T = x_ref.shape
    x = x_ref[...]

    t_idx = lax.broadcasted_iota(jnp.int32, (B, 1, T), 2)
    mask_own = t_idx < seq_own_ref[...]            # (B, 1, T)
    mask_fin = t_idx < seq_srt_ref[...]            # reference quirk mask

    # ---- stats: per-(condition, channel) moments via one one-hot matmul ----
    xm = jnp.where(mask_own, x, 0.0)
    moments = jnp.concatenate(
        [jnp.sum(xm, axis=2), jnp.sum(xm * xm, axis=2)], axis=1)       # (B, 2C)
    sums = jnp.dot(onehot_cb_ref[...], moments,
                   preferred_element_type=jnp.float32)                 # (nc, 2C)
    inv_n = inv_n_ref[...]                                             # (nc, 1)
    mean = sums[:, :C] * inv_n
    power = sums[:, C:] * inv_n
    var = jnp.maximum(bessel_ref[...] * (power - mean * mean), 0.0)
    inv_std = 1.0 / (jnp.sqrt(var) + eps)                              # tiny

    # ---- select per-row stats by condition id and fold into one affine -----
    stats = jnp.concatenate([mean, inv_std], axis=1)                   # (nc, 2C)
    rows = jnp.dot(onehot_bc_ref[...], stats,
                   preferred_element_type=jnp.float32)                 # (B, 2C)
    a = rows[:, C:] * scale_ref[...]                                   # (B, C)
    b = rows[:, :C] * a + shift_ref[...]                               # (B, C)

    z = x * a[:, :, None] - b[:, :, None]
    z = jnp.where(mask_own, z, -shift_ref[...][:, :, None])
    out_ref[...] = jnp.where(mask_fin, z, 0.0).astype(out_ref.dtype)


def _stats_kernel(x_ref, seq_ref, onehot_ref, psum_ref, *, n_t, n_t_half):
    """Pass 1: accumulate per-(condition, channel) masked moment sums.

    Grid = (n_split, n_t_half): leading axis is 'parallel' (megacore on v7x),
    inner axis 'arbitrary'. psum_ref (the output block, constant index over the
    inner axis) accumulates and is written back by Pallas at grid end.
    """
    s = pl.program_id(0)
    t = pl.program_id(1)
    tid = s * n_t_half + t

    @pl.when(t == 0)
    def _():
        psum_ref[...] = jnp.zeros_like(psum_ref)

    @pl.when(tid < n_t)                            # skip padded grid slots
    def _():
        B, C, tT = x_ref.shape
        t_idx = lax.broadcasted_iota(jnp.int32, (B, 1, tT), 2) + tid * tT
        mask = t_idx < seq_ref[...]                # (B, 1, tT)
        x = x_ref[...]
        # where-select (not multiply) so garbage in a ragged last tile can
        # never produce NaN (0 * inf/NaN) in the sums.
        xm = jnp.where(mask, x, 0.0)
        moments = jnp.concatenate(
            [jnp.sum(xm, axis=2), jnp.sum(xm * xm, axis=2)], axis=1)   # (B, 2C)
        # Single MXU push folding batch rows into their condition group.
        psum_ref[...] += jnp.dot(onehot_ref[...], moments,
                                 preferred_element_type=jnp.float32)


def _normalize_kernel(x_ref, seq_own_ref, seq_srt_ref, a_ref, b_ref, shift_ref,
                      out_ref):
    """Pass 2: one T tile; precomputed per-row affine, two masks, one store."""
    t = pl.program_id(0)
    B, C, tT = x_ref.shape
    t_idx = lax.broadcasted_iota(jnp.int32, (B, 1, tT), 2) + t * tT
    mask_own = t_idx < seq_own_ref[...]
    mask_fin = t_idx < seq_srt_ref[...]

    x = x_ref[...]
    z = x * a_ref[...][:, :, None] - b_ref[...][:, :, None]
    z = jnp.where(mask_own, z, -shift_ref[...][:, :, None])
    out_ref[...] = jnp.where(mask_fin, z, 0.0).astype(out_ref.dtype)


# --------------------------------------------------------------------------- #
# Wrapper
# --------------------------------------------------------------------------- #
def _vmem_budget_bytes():
    phys = None
    try:
        phys = getattr(pltpu.get_tpu_info(), "vmem_capacity_bytes", None)
    except Exception:
        phys = None
    if not phys:
        phys = 64 * 1024 * 1024          # assume the smallest gen (v7x per-TC)
    return int(min(phys // 2, 48 * 1024 * 1024))


def _pick_time_tile(B, C, T, budget, cap):
    # Pass-2 VMEM residency: double-buffered x + out tiles = 4 * B*C*tT*4 bytes;
    # keep it under ~2/3 of the scoped VMEM budget, lane-dense (multiple of 128).
    per_col = 16 * B * C
    max_cols = max((2 * budget // 3) // per_col, 128)
    t_full = -(-T // 128) * 128
    tT = int(min(max_cols, cap, t_full))
    tT = max((tT // 128) * 128, 128)
    return tT


def conditioned_norm(x, conditions, seq_len, scale, shift, n_conditions,
                     eps=1e-5, force_two_pass=False, max_time_tile=2048):
    B, C, T = x.shape
    conditions = np.asarray(conditions, dtype=np.int32).reshape(-1)
    seq_np = np.asarray(seq_len, dtype=np.int32).reshape(-1)
    sort_idx = np.argsort(conditions)          # same call as the reference
    seq_sorted = seq_np[sort_idx]              # used for the final (quirk) mask

    # Host-side static metadata (trace-time constants; changing them retraces).
    counts = np.zeros((n_conditions, 1), dtype=np.float64)
    for bb in range(B):
        counts[conditions[bb], 0] += float(seq_np[bb])
    inv_n = (1.0 / np.maximum(counts, 1.0)).astype(np.float32)
    n2 = np.maximum(counts, 2.0)
    bessel = (n2 / (n2 - 1.0)).astype(np.float32)
    onehot_cb = (conditions[None, :] ==
                 np.arange(n_conditions)[:, None]).astype(np.float32)   # (nc, B)
    onehot_bc = np.ascontiguousarray(onehot_cb.T)                       # (B, nc)

    seq_own = jnp.asarray(seq_np.reshape(B, 1, 1))
    seq_srt = jnp.asarray(seq_sorted.reshape(B, 1, 1))
    scale2 = jnp.asarray(scale, jnp.float32).reshape(1, C)
    shift2 = jnp.asarray(shift, jnp.float32).reshape(1, C)

    budget = _vmem_budget_bytes()
    x_bytes = B * C * T * 4

    # ---- fused path: whole tensor resident in VMEM (read once, write once) --
    if (not force_two_pass) and (4 * x_bytes + (2 << 20) <= budget):
        return pl.pallas_call(
            functools.partial(_fused_kernel, eps=eps),
            out_shape=jax.ShapeDtypeStruct((B, C, T), jnp.float32),
            compiler_params=pltpu.CompilerParams(vmem_limit_bytes=budget),
        )(x, seq_own, seq_srt, jnp.asarray(onehot_cb), jnp.asarray(onehot_bc),
          jnp.asarray(inv_n), jnp.asarray(bessel), scale2, shift2)

    # ---- pass 1: per-(condition, channel) moment sums, split across cores ---
    tT = _pick_time_tile(B, C, T, budget, max_time_tile)
    n_t = pl.cdiv(T, tT)
    n_split = 2 if n_t >= 2 else 1
    n_t_half = pl.cdiv(n_t, n_split)

    psum = pl.pallas_call(
        functools.partial(_stats_kernel, n_t=n_t, n_t_half=n_t_half),
        out_shape=jax.ShapeDtypeStruct((n_split, n_conditions, 2 * C),
                                       jnp.float32),
        grid_spec=pltpu.PrefetchScalarGridSpec(
            num_scalar_prefetch=0,
            grid=(n_split, n_t_half),
            in_specs=[
                pl.BlockSpec(
                    (B, C, tT),
                    lambda s, t: (0, 0, jnp.minimum(s * n_t_half + t, n_t - 1))),
                pl.BlockSpec((B, 1, 1), lambda s, t: (0, 0, 0)),
                pl.BlockSpec((n_conditions, B), lambda s, t: (0, 0)),
            ],
            out_specs=pl.BlockSpec((None, n_conditions, 2 * C),
                                   lambda s, t: (s, 0, 0)),
        ),
        compiler_params=pltpu.CompilerParams(
            dimension_semantics=("parallel", "arbitrary"),
            vmem_limit_bytes=budget),
    )(x, seq_own, jnp.asarray(onehot_cb))

    # Tiny finalize in the wrapper (n_cond * C elements).
    sums = jnp.sum(psum, axis=0)                       # (nc, 2C)
    inv_n_j = jnp.asarray(inv_n)
    mean = sums[:, :C] * inv_n_j
    power = sums[:, C:] * inv_n_j
    var = jnp.maximum(jnp.asarray(bessel) * (power - mean * mean), 0.0)
    inv_std = 1.0 / (jnp.sqrt(var) + eps)

    # Fold the whole pointwise chain into one per-row affine.
    a_rows = jnp.take(inv_std, conditions, axis=0) * scale2            # (B, C)
    b_rows = jnp.take(mean, conditions, axis=0) * a_rows + shift2      # (B, C)

    # ---- pass 2: normalize (parallel T tiles => megacore on v7x) ------------
    out = pl.pallas_call(
        _normalize_kernel,
        out_shape=jax.ShapeDtypeStruct((B, C, T), jnp.float32),
        grid_spec=pltpu.PrefetchScalarGridSpec(
            num_scalar_prefetch=0,
            grid=(n_t,),
            in_specs=[
                pl.BlockSpec((B, C, tT), lambda t: (0, 0, t)),
                pl.BlockSpec((B, 1, 1), lambda t: (0, 0, 0)),
                pl.BlockSpec((B, 1, 1), lambda t: (0, 0, 0)),
                pl.BlockSpec((B, C), lambda t: (0, 0)),
                pl.BlockSpec((B, C), lambda t: (0, 0)),
                pl.BlockSpec((1, C), lambda t: (0, 0)),
            ],
            out_specs=pl.BlockSpec((B, C, tT), lambda t: (0, 0, t)),
        ),
        compiler_params=pltpu.CompilerParams(
            dimension_semantics=("parallel",),
            vmem_limit_bytes=budget),
    )(x, seq_own, seq_srt, a_rows, b_rows, shift2)
    return out


# --------------------------------------------------------------------------- #
# NumPy reference (port of ConditionedNorm.forward, training-mode stats path)
# --------------------------------------------------------------------------- #
def _reference(x, conditions, seq_len, scale, shift, eps=1e-5):
    x = np.asarray(x, dtype=np.float64)
    scale = np.asarray(scale, dtype=np.float64)
    shift = np.asarray(shift, dtype=np.float64)
    B, C, T = x.shape
    conditions = np.asarray(conditions)
    seq_len = np.asarray(seq_len)
    sort_idx = np.argsort(conditions).flatten()
    reverse_idx = np.zeros(B, dtype=np.int64)
    reverse_idx[sort_idx] = np.arange(B)
    xs, sls, cs = x[sort_idx], seq_len[sort_idx], conditions[sort_idx]
    outs = []
    for c in sorted(set(cs.tolist())):
        ids = np.argwhere(cs == c).flatten()
        xg, slg = xs[ids], sls[ids]
        mask = (np.arange(T)[None, None, :] < slg[:, None, None]).astype(np.float64)
        mask = np.broadcast_to(mask, xg.shape)
        n = mask.sum(axis=(0, 2), keepdims=True)
        xm = xg * mask
        mean = xm.sum(axis=(0, 2), keepdims=True) / np.maximum(n, 1.0)
        power = (xm ** 2).sum(axis=(0, 2), keepdims=True) / np.maximum(n, 1.0)
        y = xg - mean
        n2 = np.maximum(n, 2.0)
        var = n2 / (n2 - 1.0) * (power - mean ** 2)
        y = y / (np.sqrt(var) + eps)
        outs.append(y * mask)
    y = np.concatenate(outs, axis=0)[reverse_idx]
    y = y * scale
    y = y - shift
    final_mask = (np.arange(T)[None, None, :] < sls[:, None, None]).astype(np.float64)
    return y * final_mask


if __name__ == "__main__":
    key = jax.random.PRNGKey(0)
    n_conditions = 3
    conditions = [2, 0, 1, 0]

    # --- test 1: fused path (x fits in VMEM), T multiple of 128 --------------
    B, C, T = 4, 16, 256
    seq_len = [200, 256, 64, 37]
    kx, ks, kb = jax.random.split(key, 3)
    x = jax.random.normal(kx, (B, C, T), dtype=jnp.float32)
    scale = (1.0 + 0.1 * jax.random.normal(ks, (1, C, 1))).astype(jnp.float32)
    shift = (0.1 * jax.random.normal(kb, (1, C, 1))).astype(jnp.float32)

    y = jax.block_until_ready(
        conditioned_norm(x, conditions, seq_len, scale, shift, n_conditions))
    y_ref = _reference(np.asarray(x), conditions, seq_len,
                       np.asarray(scale), np.asarray(shift))
    assert y.shape == (B, C, T) and y.dtype == jnp.float32
    np.testing.assert_allclose(np.asarray(y), y_ref, rtol=1e-3, atol=1e-3)

    # --- test 2: two-pass path (megacore split + ragged last time tile) ------
    T2 = 300
    seq_len2 = [300, 123, 17, 260]
    x2 = jax.random.normal(jax.random.PRNGKey(1), (B, C, T2), dtype=jnp.float32)
    y2 = jax.block_until_ready(
        conditioned_norm(x2, conditions, seq_len2, scale, shift, n_conditions,
                         force_two_pass=True, max_time_tile=128))
    y2_ref = _reference(np.asarray(x2), conditions, seq_len2,
                        np.asarray(scale), np.asarray(shift))
    np.testing.assert_allclose(np.asarray(y2), y2_ref, rtol=1e-3, atol=1e-3)

    print("KERNEL_OK")
</pallas_src>

<mosaic_0001>
module attributes {stable_mosaic.version = 11 : i64} {
  func.func @_fused_kernel(%arg0: memref<4x16x256xf32, #tpu.memory_space<vmem>>, %arg1: memref<4x1x1xi32, #tpu.memory_space<vmem>>, %arg2: memref<4x1x1xi32, #tpu.memory_space<vmem>>, %arg3: memref<3x4xf32, #tpu.memory_space<vmem>>, %arg4: memref<4x3xf32, #tpu.memory_space<vmem>>, %arg5: memref<3x1xf32, #tpu.memory_space<vmem>>, %arg6: memref<3x1xf32, #tpu.memory_space<vmem>>, %arg7: memref<1x16xf32, #tpu.memory_space<vmem>>, %arg8: memref<1x16xf32, #tpu.memory_space<vmem>>, %arg9: memref<4x16x256xf32, #tpu.memory_space<vmem>>) attributes {dimension_semantics = [], scalar_prefetch = 0 : i64, scratch_operands = 0 : i64, tpu.core_type = #tpu.core_type<tc>} {
    %c0 = arith.constant 0 : index
    %c0_0 = arith.constant 0 : index
    %c0_1 = arith.constant 0 : index
    %0 = vector.load %arg0[%c0, %c0_0, %c0_1] : memref<4x16x256xf32, #tpu.memory_space<vmem>>, vector<4x16x256xf32>
    %1 = tpu.iota {dimensions = array<i32: 2>} : vector<4x1x256xi32>
    %c0_2 = arith.constant 0 : index
    %c0_3 = arith.constant 0 : index
    %c0_4 = arith.constant 0 : index
    %2 = vector.load %arg1[%c0_2, %c0_3, %c0_4] : memref<4x1x1xi32, #tpu.memory_space<vmem>>, vector<4x1x1xi32>
    %3 = vector.broadcast %2 : vector<4x1x1xi32> to vector<4x1x256xi32>
    %4 = arith.cmpi slt, %1, %3 : vector<4x1x256xi32>
    %c0_5 = arith.constant 0 : index
    %c0_6 = arith.constant 0 : index
    %c0_7 = arith.constant 0 : index
    %5 = vector.load %arg2[%c0_5, %c0_6, %c0_7] : memref<4x1x1xi32, #tpu.memory_space<vmem>>, vector<4x1x1xi32>
    %6 = vector.broadcast %5 : vector<4x1x1xi32> to vector<4x1x256xi32>
    %7 = arith.cmpi slt, %1, %6 : vector<4x1x256xi32>
    %cst = arith.constant 0.000000e+00 : f32
    %8 = vector.shape_cast %4 : vector<4x1x256xi1> to vector<4x1x256xi1>
    %9 = vector.broadcast %8 : vector<4x1x256xi1> to vector<4x16x256xi1>
    %10 = vector.broadcast %cst : f32 to vector<4x16x256xf32>
    %11 = arith.select %9, %0, %10 : vector<4x16x256xi1>, vector<4x16x256xf32>
    %cst_8 = arith.constant dense<0.000000e+00> : vector<4x16xf32>
    %12 = vector.multi_reduction <add>, %11, %cst_8 [2] : vector<4x16x256xf32> to vector<4x16xf32>
    %13 = arith.mulf %11, %11 : vector<4x16x256xf32>
    %cst_9 = arith.constant dense<0.000000e+00> : vector<4x16xf32>
    %14 = vector.multi_reduction <add>, %13, %cst_9 [2] : vector<4x16x256xf32> to vector<4x16xf32>
    %15 = tpu.concatenate %12, %14 in 1 : vector<4x16xf32>, vector<4x16xf32> -> vector<4x32xf32>
    %c0_10 = arith.constant 0 : index
    %c0_11 = arith.constant 0 : index
    %16 = vector.load %arg3[%c0_10, %c0_11] : memref<3x4xf32, #tpu.memory_space<vmem>>, vector<3x4xf32>
    %cst_12 = arith.constant dense<0.000000e+00> : vector<3x32xf32>
    %17 = tpu.matmul %16, %15, %cst_12 {dimension_numbers = #tpu.dot_dimension_numbers<[1], [0], [0], [1], [0, 0, 1, 1], [], []>} : vector<3x4xf32>, vector<4x32xf32>, vector<3x32xf32> -> vector<3x32xf32>
    %c0_13 = arith.constant 0 : index
    %c0_14 = arith.constant 0 : index
    %18 = vector.load %arg5[%c0_13, %c0_14] : memref<3x1xf32, #tpu.memory_space<vmem>>, vector<3x1xf32>
    %19 = vector.extract_strided_slice %17 {offsets = [0, 0], sizes = [3, 16], strides = [1, 1]} : vector<3x32xf32> to vector<3x16xf32>
    %20 = vector.broadcast %18 : vector<3x1xf32> to vector<3x16xf32>
    %21 = arith.mulf %19, %20 : vector<3x16xf32>
    %22 = vector.extract_strided_slice %17 {offsets = [0, 16], sizes = [3, 16], strides = [1, 1]} : vector<3x32xf32> to vector<3x16xf32>
    %23 = vector.broadcast %18 : vector<3x1xf32> to vector<3x16xf32>
    %24 = arith.mulf %22, %23 : vector<3x16xf32>
    %c0_15 = arith.constant 0 : index
    %c0_16 = arith.constant 0 : index
    %25 = vector.load %arg6[%c0_15, %c0_16] : memref<3x1xf32, #tpu.memory_space<vmem>>, vector<3x1xf32>
    %26 = arith.mulf %21, %21 : vector<3x16xf32>
    %27 = arith.subf %24, %26 : vector<3x16xf32>
    %28 = vector.broadcast %25 : vector<3x1xf32> to vector<3x16xf32>
    %29 = arith.mulf %28, %27 : vector<3x16xf32>
    %cst_17 = arith.constant 0.000000e+00 : f32
    %30 = vector.broadcast %cst_17 : f32 to vector<3x16xf32>
    %31 = arith.maximumf %29, %30 : vector<3x16xf32>
    %32 = math.sqrt %31 : vector<3x16xf32>
    %cst_18 = arith.constant 9.99999974E-6 : f32
    %33 = vector.broadcast %cst_18 : f32 to vector<3x16xf32>
    %34 = arith.addf %32, %33 : vector<3x16xf32>
    %cst_19 = arith.constant 1.000000e+00 : f32
    %35 = vector.broadcast %cst_19 : f32 to vector<3x16xf32>
    %36 = arith.divf %35, %34 : vector<3x16xf32>
    %37 = tpu.concatenate %21, %36 in 1 : vector<3x16xf32>, vector<3x16xf32> -> vector<3x32xf32>
    %c0_20 = arith.constant 0 : index
    %c0_21 = arith.constant 0 : index
    %38 = vector.load %arg4[%c0_20, %c0_21] : memref<4x3xf32, #tpu.memory_space<vmem>>, vector<4x3xf32>
    %cst_22 = arith.constant dense<0.000000e+00> : vector<4x32xf32>
    %39 = tpu.matmul %38, %37, %cst_22 {dimension_numbers = #tpu.dot_dimension_numbers<[1], [0], [0], [1], [0, 0, 1, 1], [], []>} : vector<4x3xf32>, vector<3x32xf32>, vector<4x32xf32> -> vector<4x32xf32>
    %40 = vector.extract_strided_slice %39 {offsets = [0, 16], sizes = [4, 16], strides = [1, 1]} : vector<4x32xf32> to vector<4x16xf32>
    %c0_23 = arith.constant 0 : index
    %c0_24 = arith.constant 0 : index
    %41 = vector.load %arg7[%c0_23, %c0_24] : memref<1x16xf32, #tpu.memory_space<vmem>>, vector<1x16xf32>
    %42 = vector.broadcast %41 : vector<1x16xf32> to vector<4x16xf32>
    %43 = arith.mulf %40, %42 : vector<4x16xf32>
    %44 = vector.extract_strided_slice %39 {offsets = [0, 0], sizes = [4, 16], strides = [1, 1]} : vector<4x32xf32> to vector<4x16xf32>
    %45 = arith.mulf %44, %43 : vector<4x16xf32>
    %c0_25 = arith.constant 0 : index
    %c0_26 = arith.constant 0 : index
    %46 = vector.load %arg8[%c0_25, %c0_26] : memref<1x16xf32, #tpu.memory_space<vmem>>, vector<1x16xf32>
    %47 = vector.broadcast %46 : vector<1x16xf32> to vector<4x16xf32>
    %48 = arith.addf %45, %47 : vector<4x16xf32>
    %49 = vector.shape_cast %43 : vector<4x16xf32> to vector<4x16x1xf32>
    %50 = vector.broadcast %49 : vector<4x16x1xf32> to vector<4x16x256xf32>
    %51 = arith.mulf %0, %50 : vector<4x16x256xf32>
    %52 = vector.shape_cast %48 : vector<4x16xf32> to vector<4x16x1xf32>
    %53 = vector.broadcast %52 : vector<4x16x1xf32> to vector<4x16x256xf32>
    %54 = arith.subf %51, %53 : vector<4x16x256xf32>
    %c0_27 = arith.constant 0 : index
    %c0_28 = arith.constant 0 : index
    %55 = vector.load %arg8[%c0_27, %c0_28] : memref<1x16xf32, #tpu.memory_space<vmem>>, vector<1x16xf32>
    %56 = vector.shape_cast %55 : vector<1x16xf32> to vector<1x16x1xf32>
    %cst_29 = arith.constant 0.000000e+00 : f32
    %57 = vector.broadcast %cst_29 : f32 to vector<1x16x1xf32>
    %58 = arith.subf %57, %56 : vector<1x16x1xf32>
    %59 = vector.shape_cast %4 : vector<4x1x256xi1> to vector<4x1x256xi1>
    %60 = vector.broadcast %59 : vector<4x1x256xi1> to vector<4x16x256xi1>
    %61 = vector.shape_cast %58 : vector<1x16x1xf32> to vector<1x16x1xf32>
    %62 = vector.broadcast %61 : vector<1x16x1xf32> to vector<4x16x256xf32>
    %63 = arith.select %60, %54, %62 : vector<4x16x256xi1>, vector<4x16x256xf32>
    %cst_30 = arith.constant 0.000000e+00 : f32
    %64 = vector.shape_cast %7 : vector<4x1x256xi1> to vector<4x1x256xi1>
    %65 = vector.broadcast %64 : vector<4x1x256xi1> to vector<4x16x256xi1>
    %66 = vector.broadcast %cst_30 : f32 to vector<4x16x256xf32>
    %67 = arith.select %65, %63, %66 : vector<4x16x256xi1>, vector<4x16x256xf32>
    %c0_31 = arith.constant 0 : index
    %c0_32 = arith.constant 0 : index
    %c0_33 = arith.constant 0 : index
    %68 = vector.load %arg9[%c0_31, %c0_32, %c0_33] : memref<4x16x256xf32, #tpu.memory_space<vmem>>, vector<4x16x256xf32>
    tpu.vector_store %arg9[%c0_31, %c0_32, %c0_33], %67 {strides = array<i32>} : memref<4x16x256xf32, #tpu.memory_space<vmem>>, vector<4x16x256xf32>,
    return
  }
}

</mosaic_0001>

<bundles_post_ra>
// kernel: tpu_custom_call.1
= control target key start
LH: loop header
LB: loop body
LE: loop exit
PB: predicated region body
PF: predicated region fallthrough
CT: control target
= control target key end

     0   :  { %14 = vsyncpa [#allocation3], 0  ;;  %s1334_s0 = inlined_call_operand.hbm [shape: f32[4,16,256], index: 0, kind: input, shape index: {}]   ;;  %s1335_s1 = inlined_call_operand.vmem [shape: s32[4,1,1], index: 1, kind: input, shape index: {}]   ;;  %s1336_s2 = inlined_call_operand.vmem [shape: s32[4,1,1], index: 2, kind: input, shape index: {}]   ;;  %s1337_s3 = inlined_call_operand.vmem [shape: f32[3,4], index: 3, kind: input, shape index: {}]   ;;  %s1338_s4 = inlined_call_operand.vmem [shape: f32[4,3], index: 4, kind: input, shape index: {}]   ;;  %s1339_s5 = inlined_call_operand.vmem [shape: f32[3,1], index: 5, kind: input, shape index: {}]   ;;  %s1340_s6 = inlined_call_operand.vmem [shape: f32[3,1], index: 6, kind: input, shape index: {}]   ;;  %s1341_s7 = inlined_call_operand.vmem [shape: f32[1,16], index: 7, kind: input, shape index: {}]   ;;  %s1342_s8 = inlined_call_operand.vmem [shape: f32[1,16], index: 8, kind: input, shape index: {}]   ;;  %s1343_s9 = inlined_call_operand.hbm [shape: f32[4,16,256], index: 9, kind: output, shape index: {}]  }
   0x1   :  { %15 = vsyncpa [#allocation4], 0  ;;  %s861_s30 = smov [#allocation2]   ;;  %s813_s13 = scalar_lea.hbm %s1334_s0, 2048 }
   0x2   :  { %s21_s10 = sshll.u32 %s861_s30, 4  ;;  %p814_p0 = scmp.ne.s32.totalorder %s1334_s0, %s813_s13  ;;  %s22_s10 = int_to_ptr.vmem [resolvable:$true] %s21_s10 }
   0x3   :  { %p817_p1 = scmp.lt.u32.totalorder %s813_s13, %s1334_s0 }
   0x5   :  { %p819_p2 = pnand %p817_p1, %p814_p0 }
   0x7   :  { %822 = shalt.err (!%p819_p2)
}
   0x8   :  { %s823_s18 = scalar_lea.vmem %s22_s10, 2048  ;;  %p828_p4 = scmp.lt.s32.totalorder %s22_s10, %s22_s10 }
   0x9   :  { %p824_p3 = scmp.ne.s32.totalorder %s22_s10, %s823_s18  ;;  %p829_p5 = scmp.lt.s32.totalorder %s823_s18, %s823_s18 }
   0xb   :  { %p830_p6 = por %p829_p5, %p828_p4 }
   0xd   :  { %p831_p7 = pnand %p830_p6, %p824_p3 }
   0xf   :  { %834 = shalt.err (!%p831_p7)
}
  0x10   :  { %s862_s19 = smov 256   ;;  %s863_s20 = smov 16  }
  0x11   :  { %27 = dma.hbm_to_vmem [thread:$0]  %s1334_s0, 2048, %s22_s10, [#allocation3], %s862_s19, %s862_s19, %s863_s20  }
  0x12   :  { %857 = dma.done.wait [#allocation3], 2048  }
  0x13   :  { %858 = vsyncadd [#allocation3], 4294965248  ;;  %v864_v0 = vmov 0   ;;  %v66_v1 = vld [vmem:[%s1335_s1] sm:$0x1]  ;;  %v63_v5 = vlaneseq  ;;  %v956_v12 = vld [vmem:[#allocation2 + $0x10] sm:$0xff] }
  0x14   :  { %807 = vset.pattern.permute.xlu0 %v864_v0  ;;  %808 = vset.pattern.permute.xlu1 %v864_v0  ;;  %v68_v2 = vld [vmem:[%s1335_s1 + $0x2] sm:$0x1]  ;;  %v67_v3 = vld [vmem:[%s1335_s1 + $0x1] sm:$0x1]  ;;  %v69_v4 = vld [vmem:[%s1335_s1 + $0x3] sm:$0x1] }
  0x15   :  { %71 = vperm.xlu0 %807, %v66_v1   ;;  %85 = vperm.xlu1 %808, %v68_v2   ;;  %v946_v6 = vshrl.u32 %v63_v5, 7  ;;  %v948_v7 = vand.u32 127, %v63_v5  ;;  %v964_v15 = vld [vmem:[#allocation2 + $0x18] sm:$0xff]  ;;  %v966_v16 = vld [vmem:[#allocation2] sm:$0xff]  ;;  %v968_v17 = vld [vmem:[#allocation2 + $0x8] sm:$0xff]  ;;  %vm866_vm8 = vmmov 0  }
  0x16   :  { %v978_v18 = vld [vmem:[#allocation2 + $0x40] sm:$0xff]  ;;  %v980_v19 = vld [vmem:[#allocation2 + $0x48] sm:$0xff]  ;;  %v1026_v36 = vld [vmem:[#allocation2 + $0x30] sm:$0xff]  ;;  %vm259_vm9 = vcmask 130112   ;;  %vm288_vm10 = vcmask 1041409   ;;  %vm313_vm11 = vcmask 261312  }
  0x17   :  { %v951_v8 = vsub.s32 0, %v946_v6  ;;  %v954_v9 = vadd.s32 128, %v948_v7  ;;  %v1004_v30 = vld [vmem:[#allocation2 + $0x20] sm:$0xff]  ;;  %v1006_v31 = vld [vmem:[#allocation2 + $0x28] sm:$0xff]  ;;  %v1028_v37 = vld [vmem:[#allocation2 + $0x38] sm:$0xff]  ;;  %vm290_vm12 = vcmask 1042434  }
  0x18   :  { %v1016_v34 = vld [vmem:[#allocation2 + $0x60] sm:$0xff]  ;;  %v1018_v35 = vld [vmem:[#allocation2 + $0x68] sm:$0xff]  ;;  %v1048_v44 = vld [vmem:[#allocation2 + $0x50] sm:$0xff]  ;;  %vm292_vm13 = vcmask 1043459   ;;  %vm346_vm14 = vcmask 130048   ;;  %vm353_vm15 = vcmask 1043456  }
  0x19   :  { %78 = vperm.xlu0 %807, %v67_v3   ;;  %92 = vperm.xlu1 %808, %v69_v4   ;;  %v1050_v45 = vld [vmem:[#allocation2 + $0x58] sm:$0xff]  ;;  %v1068_v55 = vld [vmem:[#allocation2 + $0x70] sm:$0xff]  ;;  %s867_s18 = smov 112  }
  0x1a   :  { %v1070_v56 = vld [vmem:[#allocation2 + $0x78] sm:$0xff] }
  0x94   :  { %v72_v10 = vpop.permute.xlu0 %71  ;;  %v86_v11 = vpop.permute.xlu1 %85 }
  0x95   :  { %v959_v13 = vrot.slane %v72_v10, %v951_v8  ;;  %v962_v14 = vrot.slane %v86_v11, %v951_v8 }
  0x97   :  { %vm98_vm0 = vcmp.lt.s32.totalorder %v948_v7, %v959_v13  ;;  %vm99_vm1 = vcmp.lt.s32.totalorder %v954_v9, %v959_v13  ;;  %vm102_vm2 = vcmp.lt.s32.totalorder %v948_v7, %v962_v14  ;;  %vm103_vm3 = vcmp.lt.s32.totalorder %v954_v9, %v962_v14 }
  0x98   :  { %v79_v20 = vpop.permute.xlu0 %78  ;;  %v164_v21 = vsel %vm98_vm0, %v956_v12, 0.0  ;;  %v165_v22 = vsel %vm99_vm1, %v964_v15, 0.0  ;;  %v162_v23 = vsel %vm98_vm0, %v966_v16, 0.0  ;;  %v163_v24 = vsel %vm99_vm1, %v968_v17, 0.0  ;;  %v93_v25 = vpop.permute.xlu1 %92 }
  0x99   :  { %v999_v26 = vrot.slane %v79_v20, %v951_v8  ;;  %v181_v27 = vadd.f32 %v165_v22, %v164_v21  ;;  %v178_v28 = vadd.f32 %v163_v24, %v162_v23  ;;  %v1002_v29 = vrot.slane %v93_v25, %v951_v8 }
  0x9a   :  { %v170_v32 = vsel %vm102_vm2, %v978_v18, 0.0  ;;  %v171_v33 = vsel %vm103_vm3, %v980_v19, 0.0  ;;  %v172_v49 = vsel %vm102_vm2, %v1048_v44, 0.0  ;;  %v173_v50 = vsel %vm103_vm3, %v1050_v45, 0.0 }
  0x9b   :  { %vm100_vm4 = vcmp.lt.s32.totalorder %v948_v7, %v999_v26  ;;  %vm101_vm5 = vcmp.lt.s32.totalorder %v954_v9, %v999_v26  ;;  %182 = vadd.xlane.f32.xlu1 %v181_v27  ;;  %179 = vadd.xlane.f32.xlu0 %v178_v28  ;;  %vm104_vm6 = vcmp.lt.s32.totalorder %v948_v7, %v1002_v29 }
  0x9c   :  { %vm105_vm7 = vcmp.lt.s32.totalorder %v954_v9, %v1002_v29  ;;  %v190_v38 = vadd.f32 %v171_v33, %v170_v32  ;;  %v166_v39 = vsel %vm100_vm4, %v1004_v30, 0.0  ;;  %v167_v40 = vsel %vm101_vm5, %v1006_v31, 0.0 }
  0x9d   :  { %v184_v41 = vadd.f32 %v167_v40, %v166_v39  ;;  %v174_v42 = vsel %vm104_vm6, %v1016_v34, 0.0  ;;  %v175_v43 = vsel %vm105_vm7, %v1018_v35, 0.0  ;;  %v168_v46 = vsel %vm100_vm4, %v1026_v36, 0.0 }
  0x9e   :  { %v169_v47 = vsel %vm101_vm5, %v1028_v37, 0.0  ;;  %v196_v48 = vadd.f32 %v175_v43, %v174_v42  ;;  %v202_v52 = vmul.f32 %v162_v23, %v162_v23  ;;  %v203_v53 = vmul.f32 %v163_v24, %v163_v24 }
  0x9f   :  { %191 = vadd.xlane.f32.xlu1 %v190_v38  ;;  %185 = vadd.xlane.f32.xlu0 %v184_v41  ;;  %v187_v51 = vadd.f32 %v169_v47, %v168_v46  ;;  %v193_v54 = vadd.f32 %v173_v50, %v172_v49  ;;  %v206_v58 = vmul.f32 %v166_v39, %v166_v39  ;;  %v176_v60 = vsel %vm104_vm6, %v1068_v55, 0.0  ;;  %v427_v38 = vld [vmem:[%s1339_s5] sm:$0x7] }
  0xa0   :  { %v218_v57 = vadd.f32 %v203_v53, %v202_v52  ;;  %v207_v59 = vmul.f32 %v167_v40, %v167_v40  ;;  %v177_v61 = vsel %vm105_vm7, %v1070_v56, 0.0  ;;  %v210_v62 = vmul.f32 %v170_v32, %v170_v32  ;;  %v434_v40 = vld [vmem:[%s1340_s6] sm:$0x7] }
  0xa1   :  { %v211_v63 = vmul.f32 %v171_v33, %v171_v33  ;;  %v199_v1 = vadd.f32 %v177_v61, %v176_v60  ;;  %v204_v2 = vmul.f32 %v164_v21, %v164_v21  ;;  %v205_v3 = vmul.f32 %v165_v22, %v165_v22 }
  0xa2   :  { %v224_v0 = vadd.f32 %v207_v59, %v206_v58  ;;  %v214_v5 = vmul.f32 %v174_v42, %v174_v42  ;;  %v215_v11 = vmul.f32 %v175_v43, %v175_v43  ;;  %v208_v20 = vmul.f32 %v168_v46, %v168_v46 }
  0xa3   :  { %197 = vadd.xlane.f32.xlu1 %v196_v48  ;;  %188 = vadd.xlane.f32.xlu0 %v187_v51  ;;  %v230_v4 = vadd.f32 %v211_v63, %v210_v62  ;;  %v221_v10 = vadd.f32 %v205_v3, %v204_v2  ;;  %v209_v23 = vmul.f32 %v169_v47, %v169_v47  ;;  %v865_v39 = vmov 0.0  }
  0xa4   :  { %v236_v24 = vadd.f32 %v215_v11, %v214_v5  ;;  %v212_v27 = vmul.f32 %v172_v49, %v172_v49  ;;  %v213_v28 = vmul.f32 %v173_v50, %v173_v50  ;;  %v216_v33 = vmul.f32 %v176_v60, %v176_v60  ;;  %789 = vmatprep.subr.mxu0 %v865_v39 }
  0xa5   :  { %v227_v25 = vadd.f32 %v209_v23, %v208_v20  ;;  %v217_v21 = vmul.f32 %v177_v61, %v177_v61  ;;  %794 = vmatprep.subr.mxu1 %v865_v39  ;;  %791 = vmatprep.mubr.msk.f32.mxu0 %vm866_vm8, %v865_v39  ;;  %v254_v53 = vadd.s32 4294967288, %v948_v7  ;;  %v303_v59 = vadd.s32 4294967280, %v948_v7 }
  0xa6   :  { %v233_v32 = vadd.f32 %v213_v28, %v212_v27  ;;  %796 = vmatprep.mubr.msk.f32.mxu1 %vm866_vm8, %v865_v39  ;;  %v252_v60 = vsub.s32 %v948_v7, %v946_v6  ;;  %vm349_vm8 = vcmask 31744  }
  0xa7   :  { %219 = vadd.xlane.f32.xlu1 %v218_v57  ;;  %194 = vadd.xlane.f32.xlu0 %v193_v54  ;;  %v239_v22 = vadd.f32 %v217_v21, %v216_v33  ;;  %v308_v57 = vadd.s32 4294967272, %v948_v7  ;;  %v257_v58 = vsub.s32 %v254_v53, %v946_v6  ;;  %v306_v2 = vsub.s32 %v303_v59, %v946_v6 }
  0xa9   :  { %v311_v63 = vsub.s32 %v308_v57, %v946_v6 }
  0xab   :  { %225 = vadd.xlane.f32.xlu1 %v224_v0  ;;  %200 = vadd.xlane.f32.xlu0 %v199_v1 }
  0xaf   :  { %231 = vadd.xlane.f32.xlu1 %v230_v4  ;;  %222 = vadd.xlane.f32.xlu0 %v221_v10 }
  0xb3   :  { %237 = vadd.xlane.f32.xlu1 %v236_v24  ;;  %228 = vadd.xlane.f32.xlu0 %v227_v25 }
  0xb7   :  { %234 = vadd.xlane.f32.xlu0 %v233_v32 }
  0xbb   :  { %240 = vadd.xlane.f32.xlu0 %v239_v22 }
  0xc4   :  { %430 = vperm.xlu1 %808, %v427_v38  }
  0xd1   :  { %443 = vperm.xlu0 %807, %v434_v40  }
 0x128   :  { %v183_v41 = vpop.xlane.xlu1 %182  ;;  %v180_v42 = vpop.xlane.xlu0 %179 }
 0x129   :  { %v258_v0 = vrot.slane %v183_v41, %v257_v58  ;;  %v253_v4 = vrot.slane %v180_v42, %v252_v60 }
 0x12b   :  { %v260_v39 = vsel %vm259_vm9, %v258_v0, %v253_v4 }
 0x12c   :  { %v192_v43 = vpop.xlane.xlu1 %191  ;;  %v186_v46 = vpop.xlane.xlu0 %185 }
 0x12d   :  { %v273_v5 = vrot.slane %v192_v43, %v252_v60  ;;  %v264_v10 = vrot.slane %v186_v46, %v252_v60 }
 0x130   :  { %v198_v47 = vpop.xlane.xlu1 %197  ;;  %v189_v48 = vpop.xlane.xlu0 %188 }
 0x131   :  { %v268_v1 = vrot.slane %v189_v48, %v257_v58  ;;  %v282_v33 = vrot.slane %v198_v47, %v252_v60 }
 0x133   :  { %v269_v21 = vsel %vm259_vm9, %v268_v1, %v264_v10  ;;  %v783_v1 = vld [vmem:[%s1341_s7] ss:$0 sm:$0xff] }
 0x134   :  { %v220_v49 = vpop.xlane.xlu1 %219  ;;  %v195_v50 = vpop.xlane.xlu0 %194  ;;  %v289_v47 = vsel %vm288_vm10, %v269_v21, %v260_v39  ;;  %v459_v21 = vld [vmem:[%s1338_s4] sm:$0xf] }
 0x135   :  { %v277_v11 = vrot.slane %v195_v50, %v257_v58  ;;  %v307_v22 = vrot.slane %v220_v49, %v306_v2 }
 0x137   :  { %v278_v40 = vsel %vm259_vm9, %v277_v11, %v273_v5 }
 0x138   :  { %v201_v51 = vpop.xlane.xlu0 %200  ;;  %v226_v52 = vpop.xlane.xlu1 %225 }
 0x139   :  { %v318_v23 = vrot.slane %v226_v52, %v306_v2  ;;  %v286_v24 = vrot.slane %v201_v51, %v257_v58  ;;  %v291_v52 = vsel %vm290_vm12, %v278_v40, %v289_v47  ;;  %v348_v58 = vld [vmem:[%s1337_s3] sm:$0x7]  ;;  %v109_v47 = vld [vmem:[%s1336_s2 + $0x3] sm:$0x1] }
 0x13b   :  { %v287_v43 = vsel %vm259_vm9, %v286_v24, %v282_v33 }
 0x13c   :  { %v223_v54 = vpop.xlane.xlu0 %222  ;;  %v232_v61 = vpop.xlane.xlu1 %231 }
 0x13d   :  { %v312_v25 = vrot.slane %v223_v54, %v311_v63  ;;  %v327_v28 = vrot.slane %v232_v61, %v306_v2  ;;  %v293_v54 = vsel %vm292_vm13, %v287_v43, %v291_v52  ;;  %v575_v43 = vsub.s32 1, %v946_v6 }
 0x13f   :  { %v314_v46 = vsel %vm313_vm11, %v312_v25, %v307_v22 }
 0x140   :  { %v229_v62 = vpop.xlane.xlu0 %228  ;;  %v238_v32 = vpop.xlane.xlu1 %237 }
 0x141   :  { %v322_v3 = vrot.slane %v229_v62, %v311_v63  ;;  %v336_v48 = vrot.slane %v238_v32, %v306_v2  ;;  %v106_v2 = vld [vmem:[%s1336_s2] sm:$0x1] }
 0x143   :  { %v323_v38 = vsel %vm313_vm11, %v322_v3, %v318_v23  ;;  %v108_v3 = vld [vmem:[%s1336_s2 + $0x2] sm:$0x1] }
 0x144   :  { %v235_v20 = vpop.xlane.xlu0 %234  ;;  %v342_v49 = vsel %vm288_vm10, %v323_v38, %v314_v46  ;;  %v431_v60 = vpop.permute.xlu1 %430  ;;  %v107_v46 = vld [vmem:[%s1336_s2 + $0x1] sm:$0x1]  ;;  %s868_s2 = smov [#allocation5]  }
 0x145   :  { %v331_v27 = vrot.slane %v235_v20, %v311_v63 }
 0x147   :  { %v332_v41 = vsel %vm313_vm11, %v331_v27, %v327_v28 }
 0x148   :  { %v241_v42 = vpop.xlane.xlu0 %240  ;;  %v343_v53 = vsel %vm290_vm12, %v332_v41, %v342_v49  ;;  %vm460_vm12 = vcmask 23552  }
 0x149   :  { %v340_v50 = vrot.slane %v241_v42, %v311_v63 }
 0x14b   :  { %v341_v51 = vsel %vm313_vm11, %v340_v50, %v336_v48  ;;  %vm464_vm11 = vcmask 1042432   ;;  %v587_v50 = vsub.s32 2, %v946_v6 }
 0x14c   :  { %v344_v57 = vsel %vm292_vm13, %v341_v51, %v343_v53  ;;  %v599_v51 = vsub.s32 3, %v946_v6  ;;  %v784_v53 = vld [vmem:[%s1342_s8] ss:$0 sm:$0xff]  ;;  %s767_s8 = sshll.u32 %s868_s2, 4  ;;  %s768_s8 = int_to_ptr.vmem [resolvable:$true] %s767_s8 }
 0x14d   :  { %v347_v59 = vsel %vm346_vm14, %v293_v54, %v344_v57  ;;  %s835_s26 = scalar_lea.vmem %s768_s8, 2048  ;;  %p840_p9 = scmp.lt.s32.totalorder %s768_s8, %s768_s8 }
 0x14e   :  { %790 = vmatpush3.msk.msra.mxu0 %vm353_vm15, %v347_v59  ;;  %p836_p8 = scmp.ne.s32.totalorder %s768_s8, %s835_s26  ;;  %p841_p10 = scmp.lt.s32.totalorder %s835_s26, %s835_s26 }
 0x14f   :  { %792 = vmatmul.mubr.msk.f32.vlgmr.msra.gmra.mrb[0].mxu0 %vm349_vm8, %v348_v58 }
 0x150   :  { %v444_v10 = vpop.permute.xlu0 %443  ;;  %p842_p11 = por %p841_p10, %p840_p9 }
 0x152   :  { %p843_p12 = pnand %p842_p11, %p836_p8 }
 0x222   :  { %v423_v61 = vpop.f32.mrb[0].mxu0 }
 0x223   :  { %v433_v62 = vmul.f32 %v431_v60, %v423_v61  ;;  %v793_v63 = vpop.f32.mrb[1].mxu0 }
 0x225   :  { %v435_v0 = vmul.f32 %v433_v62, %v433_v62 }
 0x227   :  { %437 = vrot.lane.b32.xlu1 %v435_v0, %s863_s20 }
 0x22b   :  { %544 = vrot.lane.b32.xlu1 %v783_v1, %s863_s20 }
 0x22f   :  { %111 = vperm.xlu1 %808, %v106_v2  }
 0x233   :  { %125 = vperm.xlu1 %808, %v108_v3  }
 0x299   :  { %v438_v4 = vpop.permute.xlu1 %437 }
 0x29a   :  { %v440_v5 = vsub.f32 %v433_v62, %v438_v4 }
 0x29c   :  { %v446_v11 = vmul.f32 %v444_v10, %v440_v5 }
 0x29d   :  { %v545_v38 = vpop.permute.xlu1 %544 }
 0x29e   :  { %v447_v20 = vmax.f32 %v446_v11, 0.0 }
 0x2a0   :  { %809 = vrsqrt.f32 %v447_v20  ;;  %vm450_vm9 = vcmp.eq.f32.partialorder %v447_v20, inf  ;;  %v453_v25 = vand.u32 2147483648, %v447_v20  ;;  %vm452_vm10 = vcmp.eq.f32.partialorder %v447_v20, 0.0 }
 0x2aa   :  { %v810_v23 = vpop.eup %809 }
 0x2ab   :  { %v449_v24 = vmul.f32 %v810_v23, %v447_v20 }
 0x2ad   :  { %v451_v27 = vsel %vm450_vm9, %v447_v20, %v449_v24 }
 0x2ae   :  { %v454_v28 = vsel %vm452_vm10, %v453_v25, %v451_v27  ;;  %v112_v63 = vpop.permute.xlu1 %111 }
 0x2af   :  { %v455_v32 = vadd.f32 1e-05, %v454_v28 }
 0x2b1   :  { %811 = vrcp.f32 %v455_v32  ;;  %v1144_v32 = vrot.slane %v112_v63, %v951_v8 }
 0x2b2   :  { %v126_v1 = vpop.permute.xlu1 %125 }
 0x2b3   :  { %vm138_vm13 = vcmp.lt.s32.totalorder %v948_v7, %v1144_v32 }
 0x2bb   :  { %v812_v33 = vpop.eup %811 }
 0x2bc   :  { %v458_v22 = vsel %vm346_vm14, %v433_v62, %v812_v33  ;;  %vm139_vm14 = vcmp.lt.s32.totalorder %v954_v9, %v1144_v32 }
 0x2bd   :  { %795 = vmatpush3.msk.msra.mxu1 %vm464_vm11, %v458_v22 }
 0x2be   :  { %797 = vmatmul.mubr.msk.f32.vlgmr.msra.gmra.mrb[0].mxu1 %vm460_vm12, %v459_v21 }
 0x391   :  { %v534_v39 = vpop.f32.mrb[0].mxu1 }
 0x392   :  { %v547_v40 = vmul.f32 %v545_v38, %v534_v39  ;;  %v798_v41 = vpop.f32.mrb[1].mxu1  ;;  %v1152_v38 = vrot.slane %v126_v1, %v951_v8 }
 0x394   :  { %549 = vrot.lane.b32.xlu0 %v547_v40, %s867_s18  ;;  %v564_v42 = vrot.slane %v547_v40, %v951_v8  ;;  %v576_v48 = vrot.slane %v547_v40, %v575_v43  ;;  %v588_v49 = vrot.slane %v547_v40, %v587_v50  ;;  %v600_v52 = vrot.slane %v547_v40, %v599_v51 }
 0x395   :  { %vm142_vm9 = vcmp.lt.s32.totalorder %v948_v7, %v1152_v38  ;;  %vm143_vm10 = vcmp.lt.s32.totalorder %v954_v9, %v1152_v38 }
 0x396   :  { %567 = vbcast.lane.b32.xlu1 %v564_v42, 272 }
 0x398   :  { %118 = vperm.xlu0 %807, %v107_v46  }
 0x39a   :  { %579 = vbcast.lane.b32.xlu1 %v576_v48, 272 }
 0x39c   :  { %132 = vperm.xlu0 %807, %v109_v47  }
 0x39e   :  { %591 = vbcast.lane.b32.xlu1 %v588_v49, 272 }
 0x3a0   :  { %571 = vbcast.lane.b32.xlu0 %v564_v42, 280 }
 0x3a2   :  { %603 = vbcast.lane.b32.xlu1 %v600_v52, 272 }
 0x3a4   :  { %583 = vbcast.lane.b32.xlu0 %v576_v48, 280 }
 0x3a8   :  { %595 = vbcast.lane.b32.xlu0 %v588_v49, 280 }
 0x3ac   :  { %607 = vbcast.lane.b32.xlu0 %v600_v52, 280 }
 0x406   :  { %v550_v54 = vpop.permute.xlu0 %549 }
 0x407   :  { %v552_v57 = vmul.f32 %v550_v54, %v534_v39 }
 0x408   :  { %v568_v2 = vpop.permute.xlu1 %567 }
 0x409   :  { %v560_v58 = vadd.f32 %v784_v53, %v552_v57  ;;  %v1158_v40 = vmul.f32 %v568_v2, %v966_v16  ;;  %v1161_v41 = vmul.f32 %v568_v2, %v968_v17 }
 0x40b   :  { %v628_v59 = vrot.slane %v560_v58, %v951_v8  ;;  %v639_v60 = vrot.slane %v560_v58, %v575_v43  ;;  %v650_v6 = vrot.slane %v560_v58, %v587_v50  ;;  %v661_v61 = vrot.slane %v560_v58, %v599_v51 }
 0x40c   :  { %v580_v4 = vpop.permute.xlu1 %579 }
 0x40d   :  { %634 = vbcast.lane.b32.xlu0 %v628_v59, 264  ;;  %630 = vbcast.lane.b32.xlu1 %v628_v59, 256  ;;  %v1164_v42 = vmul.f32 %v580_v4, %v1004_v30  ;;  %v1167_v43 = vmul.f32 %v580_v4, %v1006_v31 }
 0x410   :  { %v592_v10 = vpop.permute.xlu1 %591 }
 0x411   :  { %645 = vbcast.lane.b32.xlu0 %v639_v60, 264  ;;  %641 = vbcast.lane.b32.xlu1 %v639_v60, 256  ;;  %v1170_v46 = vmul.f32 %v592_v10, %v978_v18  ;;  %v1173_v48 = vmul.f32 %v592_v10, %v980_v19 }
 0x414   :  { %v604_v20 = vpop.permute.xlu1 %603 }
 0x415   :  { %656 = vbcast.lane.b32.xlu0 %v650_v6, 264  ;;  %652 = vbcast.lane.b32.xlu1 %v650_v6, 256  ;;  %v1179_v16 = vmul.f32 %v604_v20, %v1018_v35 }
 0x417   :  { %v119_v62 = vpop.permute.xlu0 %118 }
 0x418   :  { %v1147_v33 = vrot.slane %v119_v62, %v951_v8 }
 0x419   :  { %667 = vbcast.lane.b32.xlu0 %v661_v61, 264  ;;  %663 = vbcast.lane.b32.xlu1 %v661_v61, 256 }
 0x41a   :  { %vm140_vm15 = vcmp.lt.s32.totalorder %v948_v7, %v1147_v33  ;;  %vm141_vm8 = vcmp.lt.s32.totalorder %v954_v9, %v1147_v33 }
 0x41b   :  { %v133_v0 = vpop.permute.xlu0 %132 }
 0x41c   :  { %v1155_v39 = vrot.slane %v133_v0, %v951_v8  ;;  %v1176_v8 = vmul.f32 %v604_v20, %v1016_v34 }
 0x41d   :  { %694 = vbcast.lane.b32.xlu0 %v784_v53, 264  ;;  %690 = vbcast.lane.b32.xlu1 %v784_v53, 256 }
 0x41e   :  { %vm144_vm11 = vcmp.lt.s32.totalorder %v948_v7, %v1155_v39  ;;  %vm145_vm12 = vcmp.lt.s32.totalorder %v954_v9, %v1155_v39 }
 0x41f   :  { %v572_v3 = vpop.permute.xlu0 %571 }
 0x420   :  { %v611_v17 = vmul.f32 %v572_v3, %v956_v12  ;;  %v612_v18 = vmul.f32 %v572_v3, %v964_v15 }
 0x423   :  { %v584_v5 = vpop.permute.xlu0 %583 }
 0x424   :  { %v615_v31 = vmul.f32 %v584_v5, %v1026_v36  ;;  %v616_v12 = vmul.f32 %v584_v5, %v1028_v37 }
 0x427   :  { %v596_v11 = vpop.permute.xlu0 %595 }
 0x428   :  { %v619_v15 = vmul.f32 %v596_v11, %v1048_v44  ;;  %v620_v34 = vmul.f32 %v596_v11, %v1050_v45 }
 0x42b   :  { %v608_v23 = vpop.permute.xlu0 %607 }
 0x42c   :  { %v623_v35 = vmul.f32 %v608_v23, %v1068_v55  ;;  %v624_v50 = vmul.f32 %v608_v23, %v1070_v56 }
 0x47f   :  { %v635_v24 = vpop.permute.xlu0 %634  ;;  %v1139_v25 = vpop.permute.xlu1 %630 }
 0x480   :  { %v671_v47 = vsub.f32 %v611_v17, %v635_v24  ;;  %v672_v49 = vsub.f32 %v612_v18, %v635_v24  ;;  %v669_v51 = vsub.f32 %v1158_v40, %v1139_v25  ;;  %v670_v52 = vsub.f32 %v1161_v41, %v1139_v25 }
 0x483   :  { %v646_v27 = vpop.permute.xlu0 %645  ;;  %v1141_v28 = vpop.permute.xlu1 %641 }
 0x484   :  { %v675_v53 = vsub.f32 %v615_v31, %v646_v27  ;;  %v676_v36 = vsub.f32 %v616_v12, %v646_v27  ;;  %v673_v37 = vsub.f32 %v1164_v42, %v1141_v28  ;;  %v674_v44 = vsub.f32 %v1167_v43, %v1141_v28 }
 0x487   :  { %v657_v21 = vpop.permute.xlu0 %656  ;;  %v1149_v22 = vpop.permute.xlu1 %652 }
 0x488   :  { %v679_v45 = vsub.f32 %v619_v15, %v657_v21  ;;  %v680_v55 = vsub.f32 %v620_v34, %v657_v21  ;;  %v677_v57 = vsub.f32 %v1170_v46, %v1149_v22  ;;  %v678_v58 = vsub.f32 %v1173_v48, %v1149_v22 }
 0x48b   :  { %v668_v19 = vpop.permute.xlu0 %667  ;;  %v1191_v30 = vpop.permute.xlu1 %663 }
 0x48c   :  { %v683_v59 = vsub.f32 %v623_v35, %v668_v19  ;;  %v684_v6 = vsub.f32 %v624_v50, %v668_v19  ;;  %v681_v61 = vsub.f32 %v1176_v8, %v1191_v30  ;;  %v682_v62 = vsub.f32 %v1179_v16, %v1191_v30 }
 0x48f   :  { %v695_v54 = vpop.permute.xlu0 %694  ;;  %v691_v56 = vpop.permute.xlu1 %690 }
 0x490   :  { %v697_v60 = vsub.f32 0.0, %v695_v54  ;;  %v696_v63 = vsub.f32 0.0, %v691_v56 }
 0x492   :  { %v700_v0 = vsel %vm98_vm0, %v671_v47, %v697_v60  ;;  %v701_v1 = vsel %vm99_vm1, %v672_v49, %v697_v60  ;;  %v704_v2 = vsel %vm100_vm4, %v675_v53, %v697_v60  ;;  %v705_v3 = vsel %vm101_vm5, %v676_v36, %v697_v60 }
 0x493   :  { %v708_v4 = vsel %vm102_vm2, %v679_v45, %v697_v60  ;;  %v709_v5 = vsel %vm103_vm3, %v680_v55, %v697_v60  ;;  %v712_v10 = vsel %vm104_vm6, %v683_v59, %v697_v60  ;;  %v713_v11 = vsel %vm105_vm7, %v684_v6, %v697_v60 }
 0x494   :  { %v732_v20 = vsel %vm138_vm13, %v700_v0, 0.0  ;;  %v733_v23 = vsel %vm139_vm14, %v701_v1, 0.0  ;;  %v736_v24 = vsel %vm140_vm15, %v704_v2, 0.0  ;;  %v737_v25 = vsel %vm141_vm8, %v705_v3, 0.0 }
 0x495   :  { %v740_v27 = vsel %vm142_vm9, %v708_v4, 0.0  ;;  %v741_v28 = vsel %vm143_vm10, %v709_v5, 0.0  ;;  %v744_v21 = vsel %vm144_vm11, %v712_v10, 0.0  ;;  %v745_v22 = vsel %vm145_vm12, %v713_v11, 0.0  ;;  %748 = vst [vmem:[#allocation5 + $0x10] sm:$0xff] %v732_v20  ;;  %749 = vst [vmem:[#allocation5 + $0x18] sm:$0xff] %v733_v23 }
 0x496   :  { %752 = vst [vmem:[#allocation5 + $0x30] sm:$0xff] %v736_v24  ;;  %753 = vst [vmem:[#allocation5 + $0x38] sm:$0xff] %v737_v25  ;;  %v698_v40 = vsel %vm98_vm0, %v669_v51, %v696_v63  ;;  %v699_v41 = vsel %vm99_vm1, %v670_v52, %v696_v63  ;;  %v702_v42 = vsel %vm100_vm4, %v673_v37, %v696_v63 }
 0x497   :  { %756 = vst [vmem:[#allocation5 + $0x50] sm:$0xff] %v740_v27  ;;  %757 = vst [vmem:[#allocation5 + $0x58] sm:$0xff] %v741_v28  ;;  %v703_v43 = vsel %vm101_vm5, %v674_v44, %v696_v63  ;;  %v706_v46 = vsel %vm102_vm2, %v677_v57, %v696_v63  ;;  %v707_v48 = vsel %vm103_vm3, %v678_v58, %v696_v63  ;;  %v730_v26 = vsel %vm138_vm13, %v698_v40, 0.0 }
 0x498   :  { %760 = vst [vmem:[#allocation5 + $0x70] sm:$0xff] %v744_v21  ;;  %761 = vst [vmem:[#allocation5 + $0x78] sm:$0xff] %v745_v22  ;;  %v710_v13 = vsel %vm104_vm6, %v681_v61, %v696_v63  ;;  %v711_v8 = vsel %vm105_vm7, %v682_v62, %v696_v63  ;;  %v731_v16 = vsel %vm139_vm14, %v699_v41, 0.0  ;;  %v734_v14 = vsel %vm140_vm15, %v702_v42, 0.0 }
 0x499   :  { %v735_v17 = vsel %vm141_vm8, %v703_v43, 0.0  ;;  %v738_v29 = vsel %vm142_vm9, %v706_v46, 0.0  ;;  %v739_v18 = vsel %vm143_vm10, %v707_v48, 0.0  ;;  %v742_v32 = vsel %vm144_vm11, %v710_v13, 0.0  ;;  %746 = vst [vmem:[#allocation5] sm:$0xff] %v730_v26  ;;  %747 = vst [vmem:[#allocation5 + $0x8] sm:$0xff] %v731_v16 }
 0x49a   :  { %v743_v19 = vsel %vm145_vm12, %v711_v8, 0.0  ;;  %750 = vst [vmem:[#allocation5 + $0x20] sm:$0xff] %v734_v14  ;;  %751 = vst [vmem:[#allocation5 + $0x28] sm:$0xff] %v735_v17 }
 0x49b   :  { %754 = vst [vmem:[#allocation5 + $0x40] sm:$0xff] %v738_v29  ;;  %755 = vst [vmem:[#allocation5 + $0x48] sm:$0xff] %v739_v18 }
 0x49c   :  { %758 = vst [vmem:[#allocation5 + $0x60] sm:$0xff] %v742_v32  ;;  %759 = vst [vmem:[#allocation5 + $0x68] sm:$0xff] %v743_v19 }
 0x49d   :  { %846 = shalt.err (!%p843_p12)
}
 0x49e   :  { %s847_s0 = scalar_lea.hbm %s1343_s9, 2048 }
 0x49f   :  { %p848_p13 = scmp.ne.s32.totalorder %s1343_s9, %s847_s0  ;;  %p851_p0 = scmp.lt.u32.totalorder %s847_s0, %s1343_s9 }
 0x4a1   :  { %p853_p1 = pnand %p851_p0, %p848_p13 }
 0x4a3   :  { %856 = shalt.err (!%p853_p1)
}
 0x4a4   :  { %773 = dma.vmem_to_hbm [thread:$0]  %s768_s8, 2048, %s1343_s9, [#allocation4], %s862_s19, %s862_s19, %s863_s20  }
 0x4a5   :  { %859 = dma.done.wait [#allocation4], 2048  }
 0x4a6   :  { %860 = vsyncadd [#allocation4], 4294965248 }
 0x4a7   :  { %777 = vsyncpa [#allocation3], 1 }
 0x4a8   :  { %778 = vsyncpa [#allocation4], 1 }

</bundles_post_ra>
